<compile_context>
chip_gen: v7x
topology: tpu7x:2x2x1
jax: 0.10.0
libtpu: 0.0.40
codegen_flags: <defaults>
</compile_context>

<pallas_src>
import functools

import jax
import jax.numpy as jnp
from jax.experimental import pallas as pl
from jax.experimental.pallas import tpu as pltpu


def _laziness_kernel(logit_ref, x_ref, p_ref, o_ref):
    # logit_ref: (TC, 1)   x_ref / p_ref / o_ref: (1, TC, TN)
    lam = jax.nn.sigmoid(logit_ref[...].astype(jnp.float32))   # (TC, 1), f32 on EUP
    lam = lam[None, :, :].astype(x_ref.dtype)                  # (1, TC, 1) -> broadcast over N
    x = x_ref[...]
    p = p_ref[...]
    o_ref[...] = lam * x + (1.0 - lam) * p


def _round_up(v, m):
    return (v + m - 1) // m * m


@jax.jit
def laziness_layer(laziness_logit, x, propagated):
    """laziness_logit: (C,); x, propagated: (C, N) or (B, C, N)."""
    assert x.shape == propagated.shape
    assert x.ndim in (2, 3)
    squeeze_batch = x.ndim == 2
    if squeeze_batch:
        x = x[None]
        propagated = propagated[None]
    B, C, N = x.shape
    itemsize = jnp.dtype(x.dtype).itemsize

    # ---- tile selection -------------------------------------------------
    # Lane tile: large, 128-aligned (unmasked stores).  Sublane tile: 8-aligned.
    # Cap per-array tile at ~2 MiB -> ~12 MiB total with double buffering.
    TN = min(_round_up(N, 128), 2048)
    max_tile_bytes = 2 * 1024 * 1024
    tc_cap = max(8, (max_tile_bytes // (TN * itemsize)) // 8 * 8)
    TC = min(_round_up(C, 8), tc_cap)

    C_pad = _round_up(C, TC)
    N_pad = _round_up(N, TN)

    # Pad to whole tiles (sliced off after the call; padded channels/nodes are
    # computed but discarded, which is harmless for an elementwise blend).
    xp = jnp.pad(x, ((0, 0), (0, C_pad - C), (0, N_pad - N)))
    pp = jnp.pad(propagated, ((0, 0), (0, C_pad - C), (0, N_pad - N)))
    logit_2d = jnp.pad(laziness_logit.astype(jnp.float32),
                       (0, C_pad - C)).reshape(C_pad, 1)

    grid = (B, C_pad // TC, N_pad // TN)

    cost = pl.CostEstimate(
        flops=3 * B * C_pad * N_pad,
        transcendentals=C_pad,
        bytes_accessed=3 * B * C_pad * N_pad * itemsize,
    )

    out = pl.pallas_call(
        _laziness_kernel,
        out_shape=jax.ShapeDtypeStruct((B, C_pad, N_pad), x.dtype),
        grid=grid,
        in_specs=[
            pl.BlockSpec((TC, 1), lambda b, c, n: (c, 0)),         # per-channel logits
            pl.BlockSpec((1, TC, TN), lambda b, c, n: (b, c, n)),  # x tile
            pl.BlockSpec((1, TC, TN), lambda b, c, n: (b, c, n)),  # propagated tile
        ],
        out_specs=pl.BlockSpec((1, TC, TN), lambda b, c, n: (b, c, n)),
        compiler_params=pltpu.CompilerParams(
            dimension_semantics=("parallel", "parallel", "parallel")),
        cost_estimate=cost,
    )(logit_2d, xp, pp)

    out = out[:, :C, :N]
    return out[0] if squeeze_batch else out


def _reference(laziness_logit, x, propagated):
    lam = jax.nn.sigmoid(laziness_logit.astype(jnp.float32))
    if x.ndim == 3:
        lam = lam[None, :, None]
    else:
        lam = lam[:, None]
    return lam * x + (1.0 - lam) * propagated


if __name__ == "__main__":
    key = jax.random.PRNGKey(0)
    k_x, k_p, k_x2, k_p2 = jax.random.split(key, 4)

    # Small shapes consistent with the module: (batch, channels, nodes).
    B, C, N = 2, 4, 16

    # Deterministic non-zero per-channel logits so the broadcast is exercised.
    laziness_logit = jnp.linspace(-1.0, 1.0, C, dtype=jnp.float32)

    x = jax.random.normal(k_x, (B, C, N), dtype=jnp.float32)
    propagated = jax.random.normal(k_p, (B, C, N), dtype=jnp.float32)

    out = jax.block_until_ready(laziness_layer(laziness_logit, x, propagated))
    ref = _reference(laziness_logit, x, propagated)
    assert out.shape == x.shape
    assert jnp.allclose(out, ref, atol=1e-6, rtol=1e-6)

    # 2-D (C, N) path.
    out2d = jax.block_until_ready(laziness_layer(laziness_logit, x[0], propagated[0]))
    ref2d = _reference(laziness_logit, x[0], propagated[0])
    assert out2d.shape == (C, N)
    assert jnp.allclose(out2d, ref2d, atol=1e-6, rtol=1e-6)

    # Ragged shape path (exercises tiling + padding: C not multiple of 8,
    # N not multiple of 128).
    C2, N2 = 12, 200
    logit2 = jnp.linspace(-0.5, 0.5, C2, dtype=jnp.float32)
    x2 = jax.random.normal(k_x2, (B, C2, N2), dtype=jnp.float32)
    p2 = jax.random.normal(k_p2, (B, C2, N2), dtype=jnp.float32)
    out3 = jax.block_until_ready(laziness_layer(logit2, x2, p2))
    ref3 = _reference(logit2, x2, p2)
    assert out3.shape == x2.shape
    assert jnp.allclose(out3, ref3, atol=1e-6, rtol=1e-6)

    print("KERNEL_OK")
</pallas_src>

<mosaic_0001>
module attributes {stable_mosaic.version = 11 : i64} {
  func.func @_laziness_kernel(%arg0: i32, %arg1: i32, %arg2: i32, %arg3: memref<8x1xf32, #tpu.memory_space<vmem>>, %arg4: memref<1x8x128xf32, #tpu.memory_space<vmem>>, %arg5: memref<1x8x128xf32, #tpu.memory_space<vmem>>, %arg6: memref<1x8x128xf32, #tpu.memory_space<vmem>>) attributes {dimension_semantics = [#tpu.dimension_semantics<parallel>, #tpu.dimension_semantics<parallel>, #tpu.dimension_semantics<parallel>], iteration_bounds = array<i64: 2, 1, 1>, scalar_prefetch = 0 : i64, scratch_operands = 0 : i64, tpu.core_type = #tpu.core_type<tc>, window_params = [{transform_indices = @transform_0, window_bounds = array<i64: 8, 1>}, {transform_indices = @transform_1, window_bounds = array<i64: 1, 8, 128>}, {transform_indices = @transform_2, window_bounds = array<i64: 1, 8, 128>}, {transform_indices = @transform_3, window_bounds = array<i64: 1, 8, 128>}]} {
    %c0 = arith.constant 0 : index
    %c0_0 = arith.constant 0 : index
    %0 = vector.load %arg3[%c0, %c0_0] : memref<8x1xf32, #tpu.memory_space<vmem>>, vector<8x1xf32>
    %1 = arith.negf %0 : vector<8x1xf32>
    %2 = math.exp %1 : vector<8x1xf32>
    %cst = arith.constant 1.000000e+00 : f32
    %3 = vector.broadcast %cst : f32 to vector<8x1xf32>
    %4 = arith.addf %3, %2 : vector<8x1xf32>
    %5 = arith.divf %3, %4 : vector<8x1xf32>
    %6 = vector.shape_cast %5 : vector<8x1xf32> to vector<1x8x1xf32>
    %c0_1 = arith.constant 0 : index
    %c0_2 = arith.constant 0 : index
    %c0_3 = arith.constant 0 : index
    %7 = vector.load %arg4[%c0_1, %c0_2, %c0_3] : memref<1x8x128xf32, #tpu.memory_space<vmem>>, vector<1x8x128xf32>
    %c0_4 = arith.constant 0 : index
    %c0_5 = arith.constant 0 : index
    %c0_6 = arith.constant 0 : index
    %8 = vector.load %arg5[%c0_4, %c0_5, %c0_6] : memref<1x8x128xf32, #tpu.memory_space<vmem>>, vector<1x8x128xf32>
    %9 = vector.broadcast %6 : vector<1x8x1xf32> to vector<1x8x128xf32>
    %10 = arith.mulf %9, %7 : vector<1x8x128xf32>
    %cst_7 = arith.constant 1.000000e+00 : f32
    %11 = vector.broadcast %cst_7 : f32 to vector<1x8x1xf32>
    %12 = arith.subf %11, %6 : vector<1x8x1xf32>
    %13 = vector.broadcast %12 : vector<1x8x1xf32> to vector<1x8x128xf32>
    %14 = arith.mulf %13, %8 : vector<1x8x128xf32>
    %15 = arith.addf %10, %14 : vector<1x8x128xf32>
    %c0_8 = arith.constant 0 : index
    %c0_9 = arith.constant 0 : index
    %c0_10 = arith.constant 0 : index
    %16 = vector.load %arg6[%c0_8, %c0_9, %c0_10] : memref<1x8x128xf32, #tpu.memory_space<vmem>>, vector<1x8x128xf32>
    tpu.vector_store %arg6[%c0_8, %c0_9, %c0_10], %15 {strides = array<i32>} : memref<1x8x128xf32, #tpu.memory_space<vmem>>, vector<1x8x128xf32>,
    return
  }
  func.func @transform_0(%arg0: i32, %arg1: i32, %arg2: i32) -> (i32, i32) {
    %c0_i32 = arith.constant 0 : i32
    %c0_i32_0 = arith.constant 0 : i32
    return %arg1, %c0_i32 : i32, i32
  }
  func.func @transform_1(%arg0: i32, %arg1: i32, %arg2: i32) -> (i32, i32, i32) {
    %c0_i32 = arith.constant 0 : i32
    return %arg0, %arg1, %arg2 : i32, i32, i32
  }
  func.func @transform_2(%arg0: i32, %arg1: i32, %arg2: i32) -> (i32, i32, i32) {
    %c0_i32 = arith.constant 0 : i32
    return %arg0, %arg1, %arg2 : i32, i32, i32
  }
  func.func @transform_3(%arg0: i32, %arg1: i32, %arg2: i32) -> (i32, i32, i32) {
    %c0_i32 = arith.constant 0 : i32
    return %arg0, %arg1, %arg2 : i32, i32, i32
  }
}

</mosaic_0001>

<bundles_post_ra>
// kernel: laziness_layer.1
= control target key start
LH: loop header
LB: loop body
LE: loop exit
PB: predicated region body
PF: predicated region fallthrough
CT: control target
= control target key end

     0   :  { %s514_s12 = smov 0   ;;  %s516_s13 = smov 0   ;;  %s553_s0 = inlined_call_operand.vmem [shape: f32[8,1], index: 0, kind: input, shape index: {}]   ;;  %s554_s1 = inlined_call_operand.vmem [shape: f32[2,8,128], index: 1, kind: input, shape index: {}]   ;;  %s555_s2 = inlined_call_operand.vmem [shape: f32[2,8,128], index: 2, kind: input, shape index: {}]   ;;  %s556_s3 = inlined_call_operand.vmem [shape: f32[2,8,128], index: 3, kind: output, shape index: {}]  }
   0x1   :  { %s518_s14 = smov 0  }
   0x2 LB: > { %s32_s15 = sadd.s32 1, %s487_s13  ;;  %p432_p0 = scmp.ge.s32.totalorder %s491_s14, 1  ;;  %s491_s14 = sphi %s518_s14, %s13_s14   ;;  %s487_s13 = sphi %s516_s13, %s558_s13   ;;  %s483_s12 = sphi %s514_s12, %s557_s12  }
   0x3   : > { %p34_p1 = scmp.ge.s32.totalorder %s32_s15, 2  ;;  %p197_p2 = scmp.lt.s32.totalorder %s491_s14, 3 }
   0x5   : > { %s560_s15 = smov (%p34_p1, %s32_s15), 0  ;;  %p198_p3 = pnand %p432_p0, %p197_p2 }
   0x6   : > { %v279_v0 = vld [vmem:[%s553_s0] sm:$0xff] (!%p198_p3)  ;;  %v493_v1 = vmov (!%p198_p3), 0   ;;  %p249_p4 = scmp.lt.s32.totalorder (!%p198_p3), %s483_s12, 1 }
   0x7   : > { %201 = sbr.rel (%p198_p3) target bundleno = 170 (0xaa), region = 32  ;;  %464 = vset.pattern.permute.xlu0 (!%p198_p3), %v493_v1  ;;  %v436_v2 = vmul.f32 (!%p198_p3), -1.442695, %v279_v0 }
   0x9   : > { %465 = vpow2.f32 (!%p198_p3), %v436_v2 }
   0xe   : > { %s562_s12 = smov (!%p249_p4, %s483_s12), 1 }
   0xf   : > { %s433_s18 = sshll.u32 %s562_s12, 3 }
  0x10   : > { %s258_s21 = scalar_lea.vmem %s554_s1, %s433_s18  ;;  %s268_s24 = scalar_lea.vmem %s555_s2, %s433_s18 }
  0x11   : > { %v286_v8 = vld [vmem:[%s258_s21] sm:$0xff]  ;;  %s278_s27 = scalar_lea.vmem %s556_s3, %s433_s18 }
  0x12   : > { %v287_v9 = vld [vmem:[%s268_s24] sm:$0xff] }
  0x13   : > { %v466_v3 = vpop.eup %465 }
  0x14   : > { %v283_v4 = vadd.f32 1.0, %v466_v3 }
  0x16   : > { %467 = vrcp.f32 %v283_v4 }
  0x20   : > { %v468_v5 = vpop.eup %467 }
  0x21   : > { %290 = vperm.xlu0 %464, %v468_v5   ;;  %v294_v6 = vsub.f32 1.0, %v468_v5 }
  0x25   : > { %297 = vperm.xlu0 %464, %v294_v6  }
  0xa0   : > { %v291_v7 = vpop.permute.xlu0 %290 }
  0xa1   : > { %v293_v11 = vmul.f32 %v291_v7, %v286_v8 }
  0xa4   : > { %v298_v10 = vpop.permute.xlu0 %297 }
  0xa5   : > { %v300_v12 = vmul.f32 %v298_v10, %v287_v9 }
  0xa7   : > { %v301_v13 = vadd.f32 %v300_v12, %v293_v11 }
  0xa9   : > { %302 = vst [vmem:[%s278_s27] sm:$0xff] %v301_v13 }
  0xaa PF: > { %s13_s14 = sadd.s32 1, %s491_s14   ;;  %s557_s12 = smov %s487_s13 }
  0xab   : > { %p10_p5 = scmp.ge.s32.totalorder %s13_s14, 4   ;;  %s558_s13 = smov %s560_s15 }
  0xad   :  { %12 = sbr.rel (!%p10_p5) target bundleno = 2 (0x2), region = 68 }

</bundles_post_ra>
